<compile_context>
chip_gen: v7x
topology: tpu7x:2x2x1
jax: 0.10.0
libtpu: 0.0.40
codegen_flags: <defaults>
</compile_context>

<pallas_src>
import functools
import math

import jax
import jax.numpy as jnp
from jax.experimental import pallas as pl
from jax.experimental.pallas import tpu as pltpu


# ----------------------------------------------------------------------------
# Pallas kernel: whole RealNVP forward (direct mode) for one batch tile.
# Layout: batch in lanes.  x_ref is (D, TILE_B); weights are pre-transposed.
# ----------------------------------------------------------------------------
def realnvp_fwd_kernel(x_ref, w1_ref, b1_ref, w2_ref, b2_ref, w3_ref, b3_ref,
                       y_ref, logdet_ref, *, n_layers, input_dim):
    bf16 = jnp.bfloat16
    x = x_ref[...]                                          # (D, TB) f32
    logdet = jnp.zeros((1, x.shape[1]), jnp.float32)

    for l in range(n_layers):       # static unroll: n_layers is small & static
        # Masks are folded into w1 (input columns) and w3/b3 (output rows), so
        # each coupling layer is just a fused 3-layer MLP on the full x.
        h = jnp.dot(w1_ref[l], x.astype(bf16),
                    preferred_element_type=jnp.float32) + b1_ref[l]   # (2H, TB)
        h = jnp.maximum(h, 0.0).astype(bf16)      # ReLU, single bf16 downcast
        h = jnp.dot(w2_ref[l], h,
                    preferred_element_type=jnp.float32) + b2_ref[l]   # (2H, TB)
        h = jnp.maximum(h, 0.0).astype(bf16)
        st = jnp.dot(w3_ref[l], h,
                     preferred_element_type=jnp.float32) + b3_ref[l]  # (2D, TB)

        # rows [:D] -> s-net (pre-masked, so masked rows are exactly 0),
        # rows [D:] -> t-net (pre-masked).
        s = jnp.tanh(st[:input_dim, :])                     # s_tanh_activation=True
        t = st[input_dim:, :]

        # direct mode: y = x * exp(s) + t ; log_det += sum_features(s)
        x = x * jnp.exp(s) + t
        logdet = logdet + jnp.sum(s, axis=0, keepdims=True)   # sublane reduce

    y_ref[...] = x                 # lane-dense (D, TB) store
    logdet_ref[...] = logdet       # lane-dense (1, TB) store


# ----------------------------------------------------------------------------
# Parameter construction (deterministic, mimics nn.Linear init shapes).
# Unfused (reference) layout: weights (L, in, out); biases (L, out); masks (L, D).
# ----------------------------------------------------------------------------
def _init_linear(key, fan_in, fan_out):
    kw, kb = jax.random.split(key)
    bound = 1.0 / math.sqrt(fan_in)
    w = jax.random.uniform(kw, (fan_in, fan_out), jnp.float32, -bound, bound)
    b = jax.random.uniform(kb, (fan_out,), jnp.float32, -bound, bound)
    return w, b


def init_realnvp_params(key, input_dim, hid_dim, n_layers):
    assert n_layers >= 2
    # masks, same construction as RealNVP.__init__
    m = (jnp.arange(input_dim) % 2).astype(jnp.float32)
    masks = [m]
    for _ in range(n_layers - 2):
        m = 1.0 - m
        masks.append(m)
    masks.append(1.0 - m)
    masks = jnp.stack(masks)                                  # (L, D)

    keys = jax.random.split(key, n_layers * 6).reshape(n_layers, 6, 2)
    names = ("sw1", "sb1", "sw2", "sb2", "sw3", "sb3",
             "tw1", "tb1", "tw2", "tb2", "tw3", "tb3")
    stacked = {name: [] for name in names}
    for l in range(n_layers):
        sw1, sb1 = _init_linear(keys[l, 0], input_dim, hid_dim)
        sw2, sb2 = _init_linear(keys[l, 1], hid_dim, hid_dim)
        sw3, sb3 = _init_linear(keys[l, 2], hid_dim, input_dim)
        tw1, tb1 = _init_linear(keys[l, 3], input_dim, hid_dim)
        tw2, tb2 = _init_linear(keys[l, 4], hid_dim, hid_dim)
        tw3, tb3 = _init_linear(keys[l, 5], hid_dim, input_dim)
        for name, val in zip(names, (sw1, sb1, sw2, sb2, sw3, sb3,
                                     tw1, tb1, tw2, tb2, tw3, tb3)):
            stacked[name].append(val)
    params = {k: jnp.stack(v) for k, v in stacked.items()}
    return masks, params


def _block_diag(a, b):
    ra, ca = a.shape
    rb, cb = b.shape
    out = jnp.zeros((ra + rb, ca + cb), a.dtype)
    out = out.at[:ra, :ca].set(a)
    out = out.at[ra:, ca:].set(b)
    return out


def fuse_params(params, masks):
    """Fuse s/t nets per layer, pre-transpose for batch-in-lanes, fold masks.

    Returned layout (weights bf16, biases f32):
      w1: (L, 2H, D)  with masked input columns zeroed      (x*mask folded in)
      w2: (L, 2H, 2H) block-diag(sw2.T, tw2.T)
      w3: (L, 2D, 2H) block-diag, rows pre-multiplied by (1 - mask)
      b1: (L, 2H, 1)  b2: (L, 2H, 1)  b3: (L, 2D, 1) pre-multiplied by (1-mask)
    """
    L, D = masks.shape
    w1s, b1s, w2s, b2s, w3s, b3s = [], [], [], [], [], []
    for l in range(L):
        mask = masks[l]                                      # (D,)
        omask = 1.0 - mask
        w1 = jnp.concatenate([params["sw1"][l].T, params["tw1"][l].T], axis=0)
        w1 = w1 * mask[None, :]                              # fold x*mask
        b1 = jnp.concatenate([params["sb1"][l], params["tb1"][l]], axis=0)
        w2 = _block_diag(params["sw2"][l].T, params["tw2"][l].T)
        b2 = jnp.concatenate([params["sb2"][l], params["tb2"][l]], axis=0)
        w3 = _block_diag(params["sw3"][l].T * omask[:, None],
                         params["tw3"][l].T * omask[:, None])   # fold (1-mask)
        b3 = jnp.concatenate([params["sb3"][l] * omask,
                              params["tb3"][l] * omask], axis=0)
        w1s.append(w1); b1s.append(b1[:, None])
        w2s.append(w2); b2s.append(b2[:, None])
        w3s.append(w3); b3s.append(b3[:, None])
    return {"w1": jnp.stack(w1s).astype(jnp.bfloat16), "b1": jnp.stack(b1s),
            "w2": jnp.stack(w2s).astype(jnp.bfloat16), "b2": jnp.stack(b2s),
            "w3": jnp.stack(w3s).astype(jnp.bfloat16), "b3": jnp.stack(b3s)}


# ----------------------------------------------------------------------------
# Wrapper: batch-gridded pallas_call with resident fused weights.
# ----------------------------------------------------------------------------
def realnvp_forward(x, fused, *, tile_b=256):
    B, D = x.shape
    L, two_h, _ = fused["w2"].shape
    two_d = 2 * D

    x_t = x.T                                                # (D, B) batch in lanes
    tb = min(tile_b, max(B, 128))
    tb = ((tb + 127) // 128) * 128                           # lane dim: multiple of 128
    pad = (-B) % tb
    if pad:
        x_t = jnp.pad(x_t, ((0, 0), (0, pad)))
    Bp = B + pad
    grid = (Bp // tb,)

    # Whole-array VMEM residents: DMA'd once, reused across all grid steps
    # (no per-step pipelining / double-buffering of constants).
    resident = pl.BlockSpec(memory_space=pltpu.MemorySpace.VMEM)

    weight_bytes = sum(int(v.size) * v.dtype.itemsize for v in fused.values())
    cost = pl.CostEstimate(
        flops=2 * Bp * L * (D * two_h + two_h * two_h + two_h * two_d),
        transcendentals=Bp * L * two_d,                      # tanh + exp per feature/layer
        bytes_accessed=Bp * D * 4 * 2 + Bp * 4 + weight_bytes)

    kernel = functools.partial(realnvp_fwd_kernel, n_layers=L, input_dim=D)
    y_t, logdet_t = pl.pallas_call(
        kernel,
        out_shape=(jax.ShapeDtypeStruct((D, Bp), jnp.float32),
                   jax.ShapeDtypeStruct((1, Bp), jnp.float32)),
        grid=grid,
        in_specs=[pl.BlockSpec((D, tb), lambda i: (0, i)),   # x: streamed batch tiles
                  resident, resident,                        # w1, b1
                  resident, resident,                        # w2, b2
                  resident, resident],                       # w3, b3
        out_specs=(pl.BlockSpec((D, tb), lambda i: (0, i)),
                   pl.BlockSpec((1, tb), lambda i: (0, i))),
        compiler_params=pltpu.CompilerParams(
            dimension_semantics=("parallel",),
            vmem_limit_bytes=16 << 20),                      # residents + tiles << 1 MiB
        cost_estimate=cost,
    )(x_t, fused["w1"], fused["b1"], fused["w2"], fused["b2"],
      fused["w3"], fused["b3"])

    y = y_t.T
    logdet = logdet_t.T
    if pad:
        y = y[:B]
        logdet = logdet[:B]
    return y, logdet


# ----------------------------------------------------------------------------
# Pure-JAX references.
#  - *_ref_bf16: mirrors the kernel's fused / transposed / bf16-MXU numerics.
#  - *_ref_f32:  mirrors the PyTorch module exactly in f32 (fidelity check).
# ----------------------------------------------------------------------------
def realnvp_forward_ref_bf16(x, fused):
    bf16 = jnp.bfloat16
    xt = x.T.astype(jnp.float32)                             # (D, B)
    D = xt.shape[0]
    L = fused["w1"].shape[0]
    ld = jnp.zeros((1, xt.shape[1]), jnp.float32)
    for l in range(L):
        h = jnp.dot(fused["w1"][l], xt.astype(bf16),
                    preferred_element_type=jnp.float32) + fused["b1"][l]
        h = jnp.maximum(h, 0.0).astype(bf16)
        h = jnp.dot(fused["w2"][l], h,
                    preferred_element_type=jnp.float32) + fused["b2"][l]
        h = jnp.maximum(h, 0.0).astype(bf16)
        st = jnp.dot(fused["w3"][l], h,
                     preferred_element_type=jnp.float32) + fused["b3"][l]
        s = jnp.tanh(st[:D, :])
        t = st[D:, :]
        xt = xt * jnp.exp(s) + t
        ld = ld + jnp.sum(s, axis=0, keepdims=True)
    return xt.T, ld.T


def realnvp_forward_ref_f32(x, masks, params):
    logdet = jnp.zeros((x.shape[0], 1), jnp.float32)
    L = masks.shape[0]
    for l in range(L):
        mask = masks[l]
        x_m = x * mask
        h = jax.nn.relu(x_m @ params["sw1"][l] + params["sb1"][l])
        h = jax.nn.relu(h @ params["sw2"][l] + params["sb2"][l])
        s = jnp.tanh(h @ params["sw3"][l] + params["sb3"][l]) * (1.0 - mask)
        g = jax.nn.relu(x_m @ params["tw1"][l] + params["tb1"][l])
        g = jax.nn.relu(g @ params["tw2"][l] + params["tb2"][l])
        t = (g @ params["tw3"][l] + params["tb3"][l]) * (1.0 - mask)
        x = x * jnp.exp(s) + t
        logdet = logdet + jnp.sum(s, axis=-1, keepdims=True)
    return x, logdet


if __name__ == "__main__":
    B, INPUT_DIM, HID_DIM, N_LAYERS = 256, 8, 32, 2

    key = jax.random.PRNGKey(0)
    kx, kp = jax.random.split(key)
    x = jax.random.normal(kx, (B, INPUT_DIM), jnp.float32)
    masks, params = init_realnvp_params(kp, INPUT_DIM, HID_DIM, N_LAYERS)
    fused = fuse_params(params, masks)

    y, logdets = realnvp_forward(x, fused, tile_b=256)
    jax.block_until_ready((y, logdets))

    # Tight check against a reference with identical (fused, bf16-MXU) numerics.
    y_bf, ld_bf = realnvp_forward_ref_bf16(x, fused)
    assert jnp.allclose(y, y_bf, rtol=1e-3, atol=1e-3), "y mismatch vs bf16 ref"
    assert jnp.allclose(logdets, ld_bf, rtol=1e-3, atol=1e-3), "logdet mismatch vs bf16 ref"

    # Looser fidelity check vs. exact f32 PyTorch-equivalent math (bf16 weights).
    y_f32, ld_f32 = realnvp_forward_ref_f32(x, masks, params)
    assert jnp.allclose(y, y_f32, rtol=1e-1, atol=1e-1), "y mismatch vs f32 ref"
    assert jnp.allclose(logdets, ld_f32, rtol=1e-1, atol=1e-1), "logdet mismatch vs f32 ref"

    print("KERNEL_OK")
</pallas_src>

<mosaic_0001>
module attributes {stable_mosaic.version = 11 : i64} {
  func.func @realnvp_fwd_kernel(%arg0: i32, %arg1: memref<8x256xf32, #tpu.memory_space<vmem>>, %arg2: memref<2x64x8xbf16, #tpu.memory_space<vmem>>, %arg3: memref<2x64x1xf32, #tpu.memory_space<vmem>>, %arg4: memref<2x64x64xbf16, #tpu.memory_space<vmem>>, %arg5: memref<2x64x1xf32, #tpu.memory_space<vmem>>, %arg6: memref<2x16x64xbf16, #tpu.memory_space<vmem>>, %arg7: memref<2x16x1xf32, #tpu.memory_space<vmem>>, %arg8: memref<8x256xf32, #tpu.memory_space<vmem>>, %arg9: memref<1x256xf32, #tpu.memory_space<vmem>>) attributes {dimension_semantics = [#tpu.dimension_semantics<parallel>], iteration_bounds = array<i64: 1>, scalar_prefetch = 0 : i64, scratch_operands = 0 : i64, tpu.core_type = #tpu.core_type<tc>, window_params = [{transform_indices = @transform_0, window_bounds = array<i64: 8, 256>}, {pipeline_mode = #tpu.pipeline_mode<synchronous>, transform_indices = @transform_1, window_bounds = array<i64: 2, 64, 8>}, {pipeline_mode = #tpu.pipeline_mode<synchronous>, transform_indices = @transform_2, window_bounds = array<i64: 2, 64, 1>}, {pipeline_mode = #tpu.pipeline_mode<synchronous>, transform_indices = @transform_3, window_bounds = array<i64: 2, 64, 64>}, {pipeline_mode = #tpu.pipeline_mode<synchronous>, transform_indices = @transform_4, window_bounds = array<i64: 2, 64, 1>}, {pipeline_mode = #tpu.pipeline_mode<synchronous>, transform_indices = @transform_5, window_bounds = array<i64: 2, 16, 64>}, {pipeline_mode = #tpu.pipeline_mode<synchronous>, transform_indices = @transform_6, window_bounds = array<i64: 2, 16, 1>}, {transform_indices = @transform_7, window_bounds = array<i64: 8, 256>}, {transform_indices = @transform_8, window_bounds = array<i64: 1, 256>}]} {
    %c0 = arith.constant 0 : index
    %c0_0 = arith.constant 0 : index
    %0 = vector.load %arg1[%c0, %c0_0] : memref<8x256xf32, #tpu.memory_space<vmem>>, vector<8x256xf32>
    %cst = arith.constant 0.000000e+00 : f32
    %1 = vector.broadcast %cst : f32 to vector<1x256xf32>
    %c0_1 = arith.constant 0 : index
    %c0_2 = arith.constant 0 : index
    %c0_3 = arith.constant 0 : index
    %2 = vector.load %arg2[%c0_1, %c0_2, %c0_3] : memref<2x64x8xbf16, #tpu.memory_space<vmem>>, vector<1x64x8xbf16>
    %3 = vector.shape_cast %2 : vector<1x64x8xbf16> to vector<64x8xbf16>
    %4 = arith.truncf %0 : vector<8x256xf32> to vector<8x256xbf16>
    %cst_4 = arith.constant dense<0.000000e+00> : vector<64x256xf32>
    %5 = tpu.matmul %3, %4, %cst_4 {dimension_numbers = #tpu.dot_dimension_numbers<[1], [0], [0], [1], [0, 0, 1, 1], [], []>} : vector<64x8xbf16>, vector<8x256xbf16>, vector<64x256xf32> -> vector<64x256xf32>
    %c0_5 = arith.constant 0 : index
    %c0_6 = arith.constant 0 : index
    %c0_7 = arith.constant 0 : index
    %6 = vector.load %arg3[%c0_5, %c0_6, %c0_7] : memref<2x64x1xf32, #tpu.memory_space<vmem>>, vector<1x64x1xf32>
    %7 = vector.shape_cast %6 : vector<1x64x1xf32> to vector<64x1xf32>
    %8 = vector.broadcast %7 : vector<64x1xf32> to vector<64x256xf32>
    %9 = arith.addf %5, %8 : vector<64x256xf32>
    %cst_8 = arith.constant 0.000000e+00 : f32
    %10 = vector.broadcast %cst_8 : f32 to vector<64x256xf32>
    %11 = arith.maximumf %9, %10 : vector<64x256xf32>
    %12 = arith.truncf %11 : vector<64x256xf32> to vector<64x256xbf16>
    %c0_9 = arith.constant 0 : index
    %c0_10 = arith.constant 0 : index
    %c0_11 = arith.constant 0 : index
    %13 = vector.load %arg4[%c0_9, %c0_10, %c0_11] : memref<2x64x64xbf16, #tpu.memory_space<vmem>>, vector<1x64x64xbf16>
    %14 = vector.shape_cast %13 : vector<1x64x64xbf16> to vector<64x64xbf16>
    %cst_12 = arith.constant dense<0.000000e+00> : vector<64x256xf32>
    %15 = tpu.matmul %14, %12, %cst_12 {dimension_numbers = #tpu.dot_dimension_numbers<[1], [0], [0], [1], [0, 0, 1, 1], [], []>} : vector<64x64xbf16>, vector<64x256xbf16>, vector<64x256xf32> -> vector<64x256xf32>
    %c0_13 = arith.constant 0 : index
    %c0_14 = arith.constant 0 : index
    %c0_15 = arith.constant 0 : index
    %16 = vector.load %arg5[%c0_13, %c0_14, %c0_15] : memref<2x64x1xf32, #tpu.memory_space<vmem>>, vector<1x64x1xf32>
    %17 = vector.shape_cast %16 : vector<1x64x1xf32> to vector<64x1xf32>
    %18 = vector.broadcast %17 : vector<64x1xf32> to vector<64x256xf32>
    %19 = arith.addf %15, %18 : vector<64x256xf32>
    %cst_16 = arith.constant 0.000000e+00 : f32
    %20 = vector.broadcast %cst_16 : f32 to vector<64x256xf32>
    %21 = arith.maximumf %19, %20 : vector<64x256xf32>
    %22 = arith.truncf %21 : vector<64x256xf32> to vector<64x256xbf16>
    %c0_17 = arith.constant 0 : index
    %c0_18 = arith.constant 0 : index
    %c0_19 = arith.constant 0 : index
    %23 = vector.load %arg6[%c0_17, %c0_18, %c0_19] : memref<2x16x64xbf16, #tpu.memory_space<vmem>>, vector<1x16x64xbf16>
    %24 = vector.shape_cast %23 : vector<1x16x64xbf16> to vector<16x64xbf16>
    %cst_20 = arith.constant dense<0.000000e+00> : vector<16x256xf32>
    %25 = tpu.matmul %24, %22, %cst_20 {dimension_numbers = #tpu.dot_dimension_numbers<[1], [0], [0], [1], [0, 0, 1, 1], [], []>} : vector<16x64xbf16>, vector<64x256xbf16>, vector<16x256xf32> -> vector<16x256xf32>
    %c0_21 = arith.constant 0 : index
    %c0_22 = arith.constant 0 : index
    %c0_23 = arith.constant 0 : index
    %26 = vector.load %arg7[%c0_21, %c0_22, %c0_23] : memref<2x16x1xf32, #tpu.memory_space<vmem>>, vector<1x16x1xf32>
    %27 = vector.shape_cast %26 : vector<1x16x1xf32> to vector<16x1xf32>
    %28 = vector.broadcast %27 : vector<16x1xf32> to vector<16x256xf32>
    %29 = arith.addf %25, %28 : vector<16x256xf32>
    %30 = vector.extract_strided_slice %29 {offsets = [0, 0], sizes = [8, 256], strides = [1, 1]} : vector<16x256xf32> to vector<8x256xf32>
    %31 = math.tanh %30 : vector<8x256xf32>
    %32 = vector.extract_strided_slice %29 {offsets = [8, 0], sizes = [8, 256], strides = [1, 1]} : vector<16x256xf32> to vector<8x256xf32>
    %33 = math.exp %31 : vector<8x256xf32>
    %34 = arith.mulf %0, %33 : vector<8x256xf32>
    %35 = arith.addf %34, %32 : vector<8x256xf32>
    %cst_24 = arith.constant dense<0.000000e+00> : vector<256xf32>
    %36 = vector.multi_reduction <add>, %31, %cst_24 [0] : vector<8x256xf32> to vector<256xf32>
    %37 = vector.shape_cast %36 : vector<256xf32> to vector<1x256xf32>
    %38 = arith.addf %1, %37 : vector<1x256xf32>
    %c1 = arith.constant 1 : index
    %c0_25 = arith.constant 0 : index
    %c0_26 = arith.constant 0 : index
    %39 = vector.load %arg2[%c1, %c0_25, %c0_26] : memref<2x64x8xbf16, #tpu.memory_space<vmem>>, vector<1x64x8xbf16>
    %40 = vector.shape_cast %39 : vector<1x64x8xbf16> to vector<64x8xbf16>
    %41 = arith.truncf %35 : vector<8x256xf32> to vector<8x256xbf16>
    %cst_27 = arith.constant dense<0.000000e+00> : vector<64x256xf32>
    %42 = tpu.matmul %40, %41, %cst_27 {dimension_numbers = #tpu.dot_dimension_numbers<[1], [0], [0], [1], [0, 0, 1, 1], [], []>} : vector<64x8xbf16>, vector<8x256xbf16>, vector<64x256xf32> -> vector<64x256xf32>
    %c1_28 = arith.constant 1 : index
    %c0_29 = arith.constant 0 : index
    %c0_30 = arith.constant 0 : index
    %43 = vector.load %arg3[%c1_28, %c0_29, %c0_30] : memref<2x64x1xf32, #tpu.memory_space<vmem>>, vector<1x64x1xf32>
    %44 = vector.shape_cast %43 : vector<1x64x1xf32> to vector<64x1xf32>
    %45 = vector.broadcast %44 : vector<64x1xf32> to vector<64x256xf32>
    %46 = arith.addf %42, %45 : vector<64x256xf32>
    %cst_31 = arith.constant 0.000000e+00 : f32
    %47 = vector.broadcast %cst_31 : f32 to vector<64x256xf32>
    %48 = arith.maximumf %46, %47 : vector<64x256xf32>
    %49 = arith.truncf %48 : vector<64x256xf32> to vector<64x256xbf16>
    %c1_32 = arith.constant 1 : index
    %c0_33 = arith.constant 0 : index
    %c0_34 = arith.constant 0 : index
    %50 = vector.load %arg4[%c1_32, %c0_33, %c0_34] : memref<2x64x64xbf16, #tpu.memory_space<vmem>>, vector<1x64x64xbf16>
    %51 = vector.shape_cast %50 : vector<1x64x64xbf16> to vector<64x64xbf16>
    %cst_35 = arith.constant dense<0.000000e+00> : vector<64x256xf32>
    %52 = tpu.matmul %51, %49, %cst_35 {dimension_numbers = #tpu.dot_dimension_numbers<[1], [0], [0], [1], [0, 0, 1, 1], [], []>} : vector<64x64xbf16>, vector<64x256xbf16>, vector<64x256xf32> -> vector<64x256xf32>
    %c1_36 = arith.constant 1 : index
    %c0_37 = arith.constant 0 : index
    %c0_38 = arith.constant 0 : index
    %53 = vector.load %arg5[%c1_36, %c0_37, %c0_38] : memref<2x64x1xf32, #tpu.memory_space<vmem>>, vector<1x64x1xf32>
    %54 = vector.shape_cast %53 : vector<1x64x1xf32> to vector<64x1xf32>
    %55 = vector.broadcast %54 : vector<64x1xf32> to vector<64x256xf32>
    %56 = arith.addf %52, %55 : vector<64x256xf32>
    %cst_39 = arith.constant 0.000000e+00 : f32
    %57 = vector.broadcast %cst_39 : f32 to vector<64x256xf32>
    %58 = arith.maximumf %56, %57 : vector<64x256xf32>
    %59 = arith.truncf %58 : vector<64x256xf32> to vector<64x256xbf16>
    %c1_40 = arith.constant 1 : index
    %c0_41 = arith.constant 0 : index
    %c0_42 = arith.constant 0 : index
    %60 = vector.load %arg6[%c1_40, %c0_41, %c0_42] : memref<2x16x64xbf16, #tpu.memory_space<vmem>>, vector<1x16x64xbf16>
    %61 = vector.shape_cast %60 : vector<1x16x64xbf16> to vector<16x64xbf16>
    %cst_43 = arith.constant dense<0.000000e+00> : vector<16x256xf32>
    %62 = tpu.matmul %61, %59, %cst_43 {dimension_numbers = #tpu.dot_dimension_numbers<[1], [0], [0], [1], [0, 0, 1, 1], [], []>} : vector<16x64xbf16>, vector<64x256xbf16>, vector<16x256xf32> -> vector<16x256xf32>
    %c1_44 = arith.constant 1 : index
    %c0_45 = arith.constant 0 : index
    %c0_46 = arith.constant 0 : index
    %63 = vector.load %arg7[%c1_44, %c0_45, %c0_46] : memref<2x16x1xf32, #tpu.memory_space<vmem>>, vector<1x16x1xf32>
    %64 = vector.shape_cast %63 : vector<1x16x1xf32> to vector<16x1xf32>
    %65 = vector.broadcast %64 : vector<16x1xf32> to vector<16x256xf32>
    %66 = arith.addf %62, %65 : vector<16x256xf32>
    %67 = vector.extract_strided_slice %66 {offsets = [0, 0], sizes = [8, 256], strides = [1, 1]} : vector<16x256xf32> to vector<8x256xf32>
    %68 = math.tanh %67 : vector<8x256xf32>
    %69 = vector.extract_strided_slice %66 {offsets = [8, 0], sizes = [8, 256], strides = [1, 1]} : vector<16x256xf32> to vector<8x256xf32>
    %70 = math.exp %68 : vector<8x256xf32>
    %71 = arith.mulf %35, %70 : vector<8x256xf32>
    %72 = arith.addf %71, %69 : vector<8x256xf32>
    %cst_47 = arith.constant dense<0.000000e+00> : vector<256xf32>
    %73 = vector.multi_reduction <add>, %68, %cst_47 [0] : vector<8x256xf32> to vector<256xf32>
    %74 = vector.shape_cast %73 : vector<256xf32> to vector<1x256xf32>
    %75 = arith.addf %38, %74 : vector<1x256xf32>
    %c0_48 = arith.constant 0 : index
    %c0_49 = arith.constant 0 : index
    %76 = vector.load %arg8[%c0_48, %c0_49] : memref<8x256xf32, #tpu.memory_space<vmem>>, vector<8x256xf32>
    tpu.vector_store %arg8[%c0_48, %c0_49], %72 {strides = array<i32>} : memref<8x256xf32, #tpu.memory_space<vmem>>, vector<8x256xf32>,
    %c0_50 = arith.constant 0 : index
    %c0_51 = arith.constant 0 : index
    %77 = vector.load %arg9[%c0_50, %c0_51] : memref<1x256xf32, #tpu.memory_space<vmem>>, vector<1x256xf32>
    tpu.vector_store %arg9[%c0_50, %c0_51], %75 {strides = array<i32>} : memref<1x256xf32, #tpu.memory_space<vmem>>, vector<1x256xf32>,
    return
  }
  func.func @transform_0(%arg0: i32) -> (i32, i32) {
    %c0_i32 = arith.constant 0 : i32
    %c0_i32_0 = arith.constant 0 : i32
    return %c0_i32, %arg0 : i32, i32
  }
  func.func @transform_1(%arg0: i32) -> (i32, i32, i32) {
    %c0_i32 = arith.constant 0 : i32
    %c0_i32_0 = arith.constant 0 : i32
    %c0_i32_1 = arith.constant 0 : i32
    %c0_i32_2 = arith.constant 0 : i32
    return %c0_i32, %c0_i32_0, %c0_i32_1 : i32, i32, i32
  }
  func.func @transform_2(%arg0: i32) -> (i32, i32, i32) {
    %c0_i32 = arith.constant 0 : i32
    %c0_i32_0 = arith.constant 0 : i32
    %c0_i32_1 = arith.constant 0 : i32
    %c0_i32_2 = arith.constant 0 : i32
    return %c0_i32, %c0_i32_0, %c0_i32_1 : i32, i32, i32
  }
  func.func @transform_3(%arg0: i32) -> (i32, i32, i32) {
    %c0_i32 = arith.constant 0 : i32
    %c0_i32_0 = arith.constant 0 : i32
    %c0_i32_1 = arith.constant 0 : i32
    %c0_i32_2 = arith.constant 0 : i32
    return %c0_i32, %c0_i32_0, %c0_i32_1 : i32, i32, i32
  }
  func.func @transform_4(%arg0: i32) -> (i32, i32, i32) {
    %c0_i32 = arith.constant 0 : i32
    %c0_i32_0 = arith.constant 0 : i32
    %c0_i32_1 = arith.constant 0 : i32
    %c0_i32_2 = arith.constant 0 : i32
    return %c0_i32, %c0_i32_0, %c0_i32_1 : i32, i32, i32
  }
  func.func @transform_5(%arg0: i32) -> (i32, i32, i32) {
    %c0_i32 = arith.constant 0 : i32
    %c0_i32_0 = arith.constant 0 : i32
    %c0_i32_1 = arith.constant 0 : i32
    %c0_i32_2 = arith.constant 0 : i32
    return %c0_i32, %c0_i32_0, %c0_i32_1 : i32, i32, i32
  }
  func.func @transform_6(%arg0: i32) -> (i32, i32, i32) {
    %c0_i32 = arith.constant 0 : i32
    %c0_i32_0 = arith.constant 0 : i32
    %c0_i32_1 = arith.constant 0 : i32
    %c0_i32_2 = arith.constant 0 : i32
    return %c0_i32, %c0_i32_0, %c0_i32_1 : i32, i32, i32
  }
  func.func @transform_7(%arg0: i32) -> (i32, i32) {
    %c0_i32 = arith.constant 0 : i32
    %c0_i32_0 = arith.constant 0 : i32
    return %c0_i32, %arg0 : i32, i32
  }
  func.func @transform_8(%arg0: i32) -> (i32, i32) {
    %c0_i32 = arith.constant 0 : i32
    %c0_i32_0 = arith.constant 0 : i32
    return %c0_i32, %arg0 : i32, i32
  }
}

</mosaic_0001>

<bundles_post_ra>
// kernel: tpu_custom_call.1
= control target key start
LH: loop header
LB: loop body
LE: loop exit
PB: predicated region body
PF: predicated region fallthrough
CT: control target
= control target key end

     0   :  { %14 = vsyncpa [#allocation3], 0  ;;  %vm124_vm0 = vcmask 1043456   ;;  %v1191_v4 = vmov 0   ;;  %vm111_vm1 = vcmask 64512   ;;  %s1510_s0 = inlined_call_operand.vmem [shape: f32[8,256], index: 0, kind: input, shape index: {}]   ;;  %s1511_s1 = inlined_call_operand.vmem [shape: bf16[2,64,8], index: 1, kind: input, shape index: {}]   ;;  %s1512_s2 = inlined_call_operand.vmem [shape: f32[2,64,1], index: 2, kind: input, shape index: {}]   ;;  %s1513_s3 = inlined_call_operand.vmem [shape: bf16[2,64,64], index: 3, kind: input, shape index: {}]   ;;  %s1514_s4 = inlined_call_operand.vmem [shape: f32[2,64,1], index: 4, kind: input, shape index: {}]   ;;  %s1515_s5 = inlined_call_operand.vmem [shape: bf16[2,16,64], index: 5, kind: input, shape index: {}]   ;;  %s1516_s6 = inlined_call_operand.vmem [shape: f32[2,16,1], index: 6, kind: input, shape index: {}]   ;;  %s1517_s7 = inlined_call_operand.hbm [shape: f32[8,256], index: 7, kind: output, shape index: {0}]   ;;  %s1518_s8 = inlined_call_operand.hbm [shape: f32[1,256], index: 8, kind: output, shape index: {1}]  }
   0x1   :  { %v1243_v0 = vld [vmem:[%s1510_s0 + $0x8] sm:$0xff]  ;;  %v1248_v1 = vld [vmem:[%s1510_s0] sm:$0xff]  ;;  %163 = vmatprep.mubr.bf16.mxu0 %v1191_v4  ;;  %1107 = vset.pattern.permute.xlu0 %v1191_v4  ;;  %v45_v8 = vld [vmem:[%s1512_s2 + $0x10] sm:$0xff] }
   0x2   :  { %v42_v2 = vpack.c.bf16 %v1243_v0, %v1243_v0  ;;  %v41_v3 = vpack.c.bf16 %v1248_v1, %v1248_v1  ;;  %1108 = vset.pattern.permute.xlu1 %v1191_v4  ;;  %349 = vmatprep.mubr.bf16.mxu1 %v1191_v4  ;;  %v1109_v6 = vld [vmem:[%s1511_s1] sm:$0xff]   ;;  %v44_v9 = vld [vmem:[%s1512_s2 + $0x8] sm:$0xff]  ;;  %v46_v10 = vld [vmem:[%s1512_s2 + $0x18] sm:$0xff] }
   0x3   :  { %v43_v7 = vld [vmem:[%s1512_s2] sm:$0xff]  ;;  %63 = vperm.xlu1 %1108, %v45_v8   ;;  %v1110_v12 = vld [vmem:[%s1511_s1 + $0x8] sm:$0xff]   ;;  %v49_v14 = vld [vmem:[%s1512_s2 + $0x30] sm:$0xff] }
   0x4   :  { %1033 = vmatprep.subr.msk.bf16.mxu0 %vm124_vm0, %v42_v2  ;;  %v126_v5 = vsel %vm124_vm0, %v41_v3, 0  ;;  %53 = vperm.xlu0 %1107, %v43_v7   ;;  %v47_v11 = vld [vmem:[%s1512_s2 + $0x20] sm:$0xff]  ;;  %v48_v13 = vld [vmem:[%s1512_s2 + $0x28] sm:$0xff]  ;;  %v50_v15 = vld [vmem:[%s1512_s2 + $0x38] sm:$0xff] }
   0x5   :  { %132 = vmatpush1.bf16.msra.mxu0 %v126_v5  ;;  %v236_v16 = vld [vmem:[%s1514_s4] sm:$0xff]  ;;  %v1111_v17 = vld [vmem:[%s1511_s1 + $0x10] sm:$0xff]   ;;  %v237_v18 = vld [vmem:[%s1514_s4 + $0x8] sm:$0xff] }
   0x6   :  { %v238_v19 = vld [vmem:[%s1514_s4 + $0x10] sm:$0xff]  ;;  %v239_v20 = vld [vmem:[%s1514_s4 + $0x18] sm:$0xff]  ;;  %v240_v21 = vld [vmem:[%s1514_s4 + $0x20] sm:$0xff] }
   0x7   :  { %68 = vperm.xlu1 %1108, %v46_v10  }
   0x8   :  { %1034 = vmatmul.mubr.msk.bf16.vlgmr.msra.gmra.mrb[0].mxu0 %vm111_vm1, %v1109_v6  ;;  %58 = vperm.xlu0 %1107, %v44_v9  }
   0x9   :  { %173 = vmatprep.mubr.bf16.mxu0 %v1191_v4 }
   0xb   :  { %78 = vperm.xlu1 %1108, %v48_v13  }
   0xc   :  { %73 = vperm.xlu0 %1107, %v47_v11  }
   0xf   :  { %88 = vperm.xlu1 %1108, %v50_v15  }
  0x10   :  { %1035 = vmatmul.mubr.msk.bf16.gmra.mrb[4].mxu0 %vm111_vm1, %v1110_v12  ;;  %83 = vperm.xlu0 %1107, %v49_v14  }
  0x11   :  { %183 = vmatprep.mubr.bf16.mxu0 %v1191_v4 }
  0x13   :  { %251 = vperm.xlu1 %1108, %v237_v18  }
  0x14   :  { %246 = vperm.xlu0 %1107, %v236_v16  }
  0x17   :  { %261 = vperm.xlu1 %1108, %v239_v20  }
  0x18   :  { %1036 = vmatmul.mubr.msk.bf16.gmra.mrb[8].mxu0 %vm111_vm1, %v1111_v17  ;;  %256 = vperm.xlu0 %1107, %v238_v19  }
  0x19   :  { %193 = vmatprep.mubr.bf16.mxu0 %v1191_v4 }
  0x1a   :  { %15 = vsyncpa [#allocation5], 0  ;;  %v1112_v22 = vld [vmem:[%s1511_s1 + $0x18] sm:$0xff]   ;;  %v241_v23 = vld [vmem:[%s1514_s4 + $0x28] sm:$0xff]  ;;  %vm304_vm2 = vcmask 523264  }
  0x1b   :  { %271 = vperm.xlu1 %1108, %v241_v23   ;;  %v242_v24 = vld [vmem:[%s1514_s4 + $0x30] sm:$0xff]  ;;  %v243_v25 = vld [vmem:[%s1514_s4 + $0x38] sm:$0xff]  ;;  %v416_v26 = vld [vmem:[%s1516_s6] sm:$0xff] }
  0x1c   :  { %266 = vperm.xlu0 %1107, %v240_v21   ;;  %v417_v27 = vld [vmem:[%s1516_s6 + $0x8] sm:$0xff]  ;;  %v1056_v28 = vld [vmem:[%s1512_s2 + $0x40] sm:$0xff]  ;;  %v1058_v30 = vld [vmem:[%s1512_s2 + $0x50] sm:$0xff] }
  0x1d   :  { %v1057_v29 = vld [vmem:[%s1512_s2 + $0x48] sm:$0xff]  ;;  %v1059_v31 = vld [vmem:[%s1512_s2 + $0x58] sm:$0xff]  ;;  %v1060_v32 = vld [vmem:[%s1512_s2 + $0x60] sm:$0xff] }
  0x1e   :  { %v1061_v33 = vld [vmem:[%s1512_s2 + $0x68] sm:$0xff]  ;;  %v1062_v34 = vld [vmem:[%s1512_s2 + $0x70] sm:$0xff]  ;;  %v1063_v35 = vld [vmem:[%s1512_s2 + $0x78] sm:$0xff] }
  0x1f   :  { %281 = vperm.xlu1 %1108, %v243_v25   ;;  %v1081_v36 = vld [vmem:[%s1514_s4 + $0x40] sm:$0xff]  ;;  %v1082_v37 = vld [vmem:[%s1514_s4 + $0x48] sm:$0xff]  ;;  %v1083_v38 = vld [vmem:[%s1514_s4 + $0x50] sm:$0xff] }
  0x20   :  { %1037 = vmatmul.mubr.msk.bf16.gmra.mrb[12].mxu0 %vm111_vm1, %v1112_v22  ;;  %276 = vperm.xlu0 %1107, %v242_v24   ;;  %v1084_v39 = vld [vmem:[%s1514_s4 + $0x58] sm:$0xff]  ;;  %v1085_v40 = vld [vmem:[%s1514_s4 + $0x60] sm:$0xff]  ;;  %v1086_v41 = vld [vmem:[%s1514_s4 + $0x68] sm:$0xff] }
  0x21   :  { %468 = vmatprep.mubr.bf16.mxu0 %v1191_v4  ;;  %v1087_v42 = vld [vmem:[%s1514_s4 + $0x70] sm:$0xff]  ;;  %v1088_v43 = vld [vmem:[%s1514_s4 + $0x78] sm:$0xff] }
  0x22   :  { %v1099_v44 = vld [vmem:[%s1516_s6 + $0x10] sm:$0xff]  ;;  %v1100_v45 = vld [vmem:[%s1516_s6 + $0x18] sm:$0xff]  ;;  %s1194_s6 = smov [#allocation4]  }
  0x23   :  { %425 = vperm.xlu1 %1108, %v417_v27   ;;  %s1017_s18 = sshll.u32 %s1194_s6, 4  ;;  %s1018_s18 = int_to_ptr.vmem [resolvable:$true] %s1017_s18 }
  0x24   :  { %420 = vperm.xlu0 %1107, %v416_v26  }
  0x27   :  { %530 = vperm.xlu1 %1108, %v1057_v29  }
  0x28   :  { %525 = vperm.xlu0 %1107, %v1056_v28  }
  0x2b   :  { %540 = vperm.xlu1 %1108, %v1059_v31  }
  0x2c   :  { %535 = vperm.xlu0 %1107, %v1058_v30  }
  0x2f   :  { %550 = vperm.xlu1 %1108, %v1061_v33  }
  0x30   :  { %545 = vperm.xlu0 %1107, %v1060_v32  }
  0x33   :  { %560 = vperm.xlu1 %1108, %v1063_v35  }
  0x34   :  { %555 = vperm.xlu0 %1107, %v1062_v34  }
  0x37   :  { %723 = vperm.xlu1 %1108, %v1082_v37  }
  0x38   :  { %718 = vperm.xlu0 %1107, %v1081_v36  }
  0x3b   :  { %733 = vperm.xlu1 %1108, %v1084_v39  }
  0x3c   :  { %728 = vperm.xlu0 %1107, %v1083_v38  }
  0x3f   :  { %743 = vperm.xlu1 %1108, %v1086_v41  }
  0x40   :  { %738 = vperm.xlu0 %1107, %v1085_v40  }
  0x43   :  { %753 = vperm.xlu1 %1108, %v1088_v43  }
  0x44   :  { %748 = vperm.xlu0 %1107, %v1087_v42  }
  0x47   :  { %898 = vperm.xlu1 %1108, %v1100_v45  }
  0x48   :  { %893 = vperm.xlu0 %1107, %v1099_v44  }
  0x82   :  { %v64_v55 = vpop.permute.xlu1 %63 }
  0x83   :  { %v54_v46 = vpop.permute.xlu0 %53 }
  0x86   :  { %v69_v5 = vpop.permute.xlu1 %68 }
  0x87   :  { %v59_v50 = vpop.permute.xlu0 %58 }
  0x8a   :  { %v79_v21 = vpop.permute.xlu1 %78 }
  0x8b   :  { %v74_v16 = vpop.permute.xlu0 %73 }
  0x8e   :  { %v89_v37 = vpop.permute.xlu1 %88 }
  0x8f   :  { %v84_v32 = vpop.permute.xlu0 %83 }
  0xdb   :  { %v165_v47 = vpop.f32.mrb[0].mxu0 }
  0xdc   :  { %v166_v48 = vadd.f32 %v165_v47, %v54_v46  ;;  %v167_v49 = vpop.f32.mrb[1].mxu0 }
  0xdd   :  { %v168_v51 = vadd.f32 %v167_v49, %v54_v46  ;;  %v169_v52 = vpop.f32.mrb[2].mxu0  ;;  %v1113_v49 = vld [vmem:[%s1513_s3] sm:$0xff]  }
  0xde   :  { %v170_v53 = vadd.f32 %v169_v52, %v59_v50  ;;  %v171_v54 = vpop.f32.mrb[3].mxu0  ;;  %v204_v57 = vmax.f32 %v166_v48, 0.0  ;;  %v1116_v52 = vld [vmem:[%s1513_s3 + $0x18] sm:$0xff]  }
  0xdf   :  { %v172_v56 = vadd.f32 %v171_v54, %v59_v50  ;;  %v205_v59 = vmax.f32 %v168_v51, 0.0  ;;  %v1114_v50 = vld [vmem:[%s1513_s3 + $0x8] sm:$0xff]   ;;  %v1115_v51 = vld [vmem:[%s1513_s3 + $0x10] sm:$0xff]  }
  0xe0   :  { %v206_v58 = vmax.f32 %v170_v53, 0.0  ;;  %v247_v53 = vpop.permute.xlu0 %246 }
  0xe1   :  { %v207_v60 = vmax.f32 %v172_v56, 0.0 }
  0xe2   :  { %v220_v61 = vpack.c.bf16 %v206_v58, %v204_v57  ;;  %v252_v57 = vpop.permute.xlu1 %251 }
  0xe3   :  { %v175_v62 = vpop.f32.mrb[4].mxu0  ;;  %v221_v63 = vpack.c.bf16 %v207_v60, %v205_v59 }
  0xe4   :  { %v176_v2 = vadd.f32 %v175_v62, %v64_v55  ;;  %v177_v3 = vpop.f32.mrb[5].mxu0 }
  0xe5   :  { %v178_v6 = vadd.f32 %v177_v3, %v64_v55  ;;  %v179_v7 = vpop.f32.mrb[6].mxu0  ;;  %317 = vmatprep.subr.bf16.mxu1 %v221_v63 }
  0xe6   :  { %v180_v8 = vadd.f32 %v179_v7, %v69_v5  ;;  %v181_v9 = vpop.f32.mrb[7].mxu0  ;;  %318 = vmatpush1.bf16.msra.mxu1 %v220_v61  ;;  %v208_v11 = vmax.f32 %v176_v2, 0.0  ;;  %v257_v7 = vpop.permute.xlu0 %256 }
  0xe7   :  { %v182_v10 = vadd.f32 %v181_v9, %v69_v5  ;;  %v209_v13 = vmax.f32 %v178_v6, 0.0 }
  0xe8   :  { %v210_v12 = vmax.f32 %v180_v8, 0.0 }
  0xe9   :  { %v211_v14 = vmax.f32 %v182_v10, 0.0 }
  0xea   :  { %v222_v15 = vpack.c.bf16 %v210_v12, %v208_v11  ;;  %v262_v12 = vpop.permute.xlu1 %261 }
  0xeb   :  { %v223_v17 = vpack.c.bf16 %v211_v14, %v209_v13  ;;  %v185_v18 = vpop.f32.mrb[8].mxu0 }
  0xec   :  { %v186_v19 = vadd.f32 %v185_v18, %v74_v16  ;;  %v187_v20 = vpop.f32.mrb[9].mxu0 }
  0xed   :  { %v188_v22 = vadd.f32 %v187_v20, %v74_v16  ;;  %v189_v23 = vpop.f32.mrb[10].mxu0  ;;  %319 = vmatprep.subr.bf16.mxu1 %v223_v17 }
  0xee   :  { %v190_v24 = vadd.f32 %v189_v23, %v79_v21  ;;  %v191_v25 = vpop.f32.mrb[11].mxu0  ;;  %320 = vmatpush1.bf16.msra.mxu1 %v222_v15  ;;  %v212_v27 = vmax.f32 %v186_v19, 0.0  ;;  %v267_v23 = vpop.permute.xlu0 %266 }
  0xef   :  { %v192_v26 = vadd.f32 %v191_v25, %v79_v21  ;;  %v213_v29 = vmax.f32 %v188_v22, 0.0 }
  0xf0   :  { %v214_v28 = vmax.f32 %v190_v24, 0.0 }
  0xf1   :  { %v215_v30 = vmax.f32 %v192_v26, 0.0 }
  0xf2   :  { %v224_v31 = vpack.c.bf16 %v214_v28, %v212_v27  ;;  %v272_v28 = vpop.permute.xlu1 %271 }
  0xf3   :  { %v225_v33 = vpack.c.bf16 %v215_v30, %v213_v29  ;;  %v195_v34 = vpop.f32.mrb[12].mxu0 }
  0xf4   :  { %v196_v35 = vadd.f32 %v195_v34, %v84_v32  ;;  %v197_v36 = vpop.f32.mrb[13].mxu0 }
  0xf5   :  { %v198_v38 = vadd.f32 %v197_v36, %v84_v32  ;;  %v199_v39 = vpop.f32.mrb[14].mxu0  ;;  %321 = vmatprep.subr.bf16.mxu1 %v225_v33 }
  0xf6   :  { %v200_v40 = vadd.f32 %v199_v39, %v89_v37  ;;  %v201_v41 = vpop.f32.mrb[15].mxu0  ;;  %322 = vmatpush1.bf16.msra.mxu1 %v224_v31  ;;  %v216_v43 = vmax.f32 %v196_v35, 0.0  ;;  %v277_v39 = vpop.permute.xlu0 %276 }
  0xf7   :  { %v202_v42 = vadd.f32 %v201_v41, %v89_v37  ;;  %v217_v45 = vmax.f32 %v198_v38, 0.0 }
  0xf8   :  { %v218_v44 = vmax.f32 %v200_v40, 0.0 }
  0xf9   :  { %v219_v46 = vmax.f32 %v202_v42, 0.0 }
  0xfa   :  { %v226_v47 = vpack.c.bf16 %v218_v44, %v216_v43  ;;  %v282_v44 = vpop.permute.xlu1 %281 }
  0xfb   :  { %v227_v48 = vpack.c.bf16 %v219_v46, %v217_v45 }
  0xfd   :  { %323 = vmatprep.subr.bf16.mxu1 %v227_v48 }
  0xfe   :  { %324 = vmatpush1.bf16.msra.mxu1 %v226_v47 }
 0x101   :  { %1042 = vmatmul.mubr.msk.bf16.vlgmr.msra.gmra.mrb[0].mxu1 %vm304_vm2, %v1113_v49 }
 0x102   :  { %359 = vmatprep.mubr.bf16.mxu1 %v1191_v4 }
 0x109   :  { %1043 = vmatmul.mubr.msk.bf16.gmra.mrb[4].mxu1 %vm304_vm2, %v1114_v50 }
 0x10a   :  { %369 = vmatprep.mubr.bf16.mxu1 %v1191_v4 }
 0x111   :  { %1044 = vmatmul.mubr.msk.bf16.gmra.mrb[8].mxu1 %vm304_vm2, %v1115_v51 }
 0x112   :  { %379 = vmatprep.mubr.bf16.mxu1 %v1191_v4 }
 0x119   :  { %1045 = vmatmul.mubr.msk.bf16.gmra.mrb[12].mxu1 %vm304_vm2, %v1116_v52 }
 0x11a   :  { %820 = vmatprep.mubr.bf16.mxu1 %v1191_v4 }
 0x1d4   :  { %v351_v54 = vpop.f32.mrb[0].mxu1 }
 0x1d5   :  { %v352_v55 = vadd.f32 %v351_v54, %v247_v53  ;;  %v353_v56 = vpop.f32.mrb[1].mxu1 }
 0x1d6   :  { %v354_v58 = vadd.f32 %v353_v56, %v247_v53  ;;  %v355_v59 = vpop.f32.mrb[2].mxu1  ;;  %v1117_v56 = vld [vmem:[%s1515_s5] sm:$0xff]  }
 0x1d7   :  { %v356_v60 = vadd.f32 %v355_v59, %v252_v57  ;;  %v357_v61 = vpop.f32.mrb[3].mxu1  ;;  %v390_v63 = vmax.f32 %v352_v55, 0.0 }
 0x1d8   :  { %v358_v62 = vadd.f32 %v357_v61, %v252_v57  ;;  %v391_v3 = vmax.f32 %v354_v58, 0.0  ;;  %v421_v57 = vpop.permute.xlu0 %420 }
 0x1d9   :  { %v392_v2 = vmax.f32 %v356_v60, 0.0 }
 0x1da   :  { %v393_v5 = vmax.f32 %v358_v62, 0.0 }
 0x1db   :  { %v406_v6 = vpack.c.bf16 %v392_v2, %v390_v63 }
 0x1dc   :  { %v407_v8 = vpack.c.bf16 %v393_v5, %v391_v3  ;;  %v361_v9 = vpop.f32.mrb[4].mxu1 }
 0x1dd   :  { %v362_v10 = vadd.f32 %v361_v9, %v257_v7  ;;  %v363_v11 = vpop.f32.mrb[5].mxu1 }
 0x1de   :  { %v364_v13 = vadd.f32 %v363_v11, %v257_v7  ;;  %v365_v14 = vpop.f32.mrb[6].mxu1  ;;  %436 = vmatprep.subr.bf16.mxu0 %v407_v8  ;;  %v426_v8 = vpop.permute.xlu1 %425 }
 0x1df   :  { %v366_v15 = vadd.f32 %v365_v14, %v262_v12  ;;  %v367_v16 = vpop.f32.mrb[7].mxu1  ;;  %437 = vmatpush1.bf16.msra.mxu0 %v406_v6  ;;  %v394_v18 = vmax.f32 %v362_v10, 0.0 }
 0x1e0   :  { %v368_v17 = vadd.f32 %v367_v16, %v262_v12  ;;  %v395_v20 = vmax.f32 %v364_v13, 0.0 }
 0x1e1   :  { %v396_v19 = vmax.f32 %v366_v15, 0.0 }
 0x1e2   :  { %v397_v21 = vmax.f32 %v368_v17, 0.0 }
 0x1e3   :  { %v408_v22 = vpack.c.bf16 %v396_v19, %v394_v18  ;;  %v1120_v19 = vld [vmem:[%s1511_s1 + $0x30] sm:$0xff]  }
 0x1e4   :  { %v409_v24 = vpack.c.bf16 %v397_v21, %v395_v20  ;;  %v371_v25 = vpop.f32.mrb[8].mxu1  ;;  %v1121_v20 = vld [vmem:[%s1511_s1 + $0x38] sm:$0xff]   ;;  %v526_v21 = vpop.permute.xlu0 %525 }
 0x1e5   :  { %v372_v26 = vadd.f32 %v371_v25, %v267_v23  ;;  %v373_v27 = vpop.f32.mrb[9].mxu1  ;;  %v531_v25 = vpop.permute.xlu1 %530 }
 0x1e6   :  { %v374_v29 = vadd.f32 %v373_v27, %v267_v23  ;;  %v375_v30 = vpop.f32.mrb[10].mxu1  ;;  %438 = vmatprep.subr.bf16.mxu0 %v409_v24 }
 0x1e7   :  { %v376_v31 = vadd.f32 %v375_v30, %v272_v28  ;;  %v377_v32 = vpop.f32.mrb[11].mxu1  ;;  %439 = vmatpush1.bf16.msra.mxu0 %v408_v22  ;;  %v398_v34 = vmax.f32 %v372_v26, 0.0 }
 0x1e8   :  { %v378_v33 = vadd.f32 %v377_v32, %v272_v28  ;;  %v399_v36 = vmax.f32 %v374_v29, 0.0 }
 0x1e9   :  { %v400_v35 = vmax.f32 %v376_v31, 0.0 }
 0x1ea   :  { %v401_v37 = vmax.f32 %v378_v33, 0.0 }
 0x1eb   :  { %v410_v38 = vpack.c.bf16 %v400_v35, %v398_v34 }
 0x1ec   :  { %v411_v40 = vpack.c.bf16 %v401_v37, %v399_v36  ;;  %v381_v41 = vpop.f32.mrb[12].mxu1  ;;  %v536_v36 = vpop.permute.xlu0 %535 }
 0x1ed   :  { %v382_v42 = vadd.f32 %v381_v41, %v277_v39  ;;  %v383_v43 = vpop.f32.mrb[13].mxu1  ;;  %v541_v41 = vpop.permute.xlu1 %540 }
 0x1ee   :  { %v384_v45 = vadd.f32 %v383_v43, %v277_v39  ;;  %v385_v46 = vpop.f32.mrb[14].mxu1  ;;  %440 = vmatprep.subr.bf16.mxu0 %v411_v40 }
 0x1ef   :  { %v386_v47 = vadd.f32 %v385_v46, %v282_v44  ;;  %v387_v48 = vpop.f32.mrb[15].mxu1  ;;  %441 = vmatpush1.bf16.msra.mxu0 %v410_v38  ;;  %v402_v50 = vmax.f32 %v382_v42, 0.0 }
 0x1f0   :  { %v388_v49 = vadd.f32 %v387_v48, %v282_v44  ;;  %v403_v52 = vmax.f32 %v384_v45, 0.0 }
 0x1f1   :  { %v404_v51 = vmax.f32 %v386_v47, 0.0 }
 0x1f2   :  { %v405_v53 = vmax.f32 %v388_v49, 0.0 }
 0x1f3   :  { %v412_v54 = vpack.c.bf16 %v404_v51, %v402_v50 }
 0x1f4   :  { %v413_v55 = vpack.c.bf16 %v405_v53, %v403_v52  ;;  %v546_v52 = vpop.permute.xlu0 %545 }
 0x1f6   :  { %442 = vmatprep.subr.bf16.mxu0 %v413_v55 }
 0x1f7   :  { %443 = vmatpush1.bf16.msra.mxu0 %v412_v54 }
 0x1fa   :  { %1047 = vmatmul.mubr.msk.bf16.vlgmr.msra.gmra.mrb[16].mxu0 %vm304_vm2, %v1117_v56 }
 0x1fb   :  { %633 = vmatprep.mubr.bf16.mxu0 %v1191_v4 }
 0x2cd   :  { %v470_v58 = vpop.f32.mrb[16].mxu0 }
 0x2ce   :  { %v471_v59 = vadd.f32 %v470_v58, %v421_v57  ;;  %v472_v60 = vpop.f32.mrb[17].mxu0 }
 0x2cf   :  { %v473_v61 = vadd.f32 %v472_v60, %v421_v57  ;;  %v474_v62 = vpop.f32.mrb[18].mxu0  ;;  %v551_v57 = vpop.permute.xlu1 %550 }
 0x2d0   :  { %1127 = vtanh.f32 %v471_v59  ;;  %v476_v63 = vpop.f32.mrb[19].mxu0  ;;  %v475_v10 = vadd.f32 %v474_v62, %v426_v8 }
 0x2d1   :  { %1129 = vtanh.f32 %v473_v61  ;;  %v477_v12 = vadd.f32 %v476_v63, %v426_v8 }
 0x2da   :  { %v1413_v2 = vpop.eup %1127 }
 0x2db   :  { %v1415_v3 = vpop.eup %1129  ;;  %v481_v5 = vmul.f32 1.442695, %v1413_v2 }
 0x2dc   :  { %v483_v6 = vmul.f32 1.442695, %v1415_v3 }
 0x2dd   :  { %1131 = vpow2.f32 %v481_v5 }
 0x2de   :  { %1133 = vpow2.f32 %v483_v6 }
 0x2e7   :  { %v1132_v7 = vpop.eup %1131 }
 0x2e8   :  { %v1134_v9 = vpop.eup %1133  ;;  %v485_v11 = vmul.f32 %v1132_v7, %v1248_v1  ;;  %v1118_v1 = vld [vmem:[%s1511_s1 + $0x20] sm:$0xff]  }
 0x2e9   :  { %v486_v13 = vmul.f32 %v1134_v9, %v1243_v0  ;;  %v1119_v0 = vld [vmem:[%s1511_s1 + $0x28] sm:$0xff]   ;;  %v556_v9 = vpop.permute.xlu0 %555 }
 0x2ea   :  { %v1421_v14 = vadd.f32 %v485_v11, %v475_v10 }
 0x2eb   :  { %v1423_v15 = vadd.f32 %v486_v13, %v477_v12 }
 0x2ec   :  { %v512_v16 = vpack.c.bf16 %v1421_v14, %v1421_v14 }
 0x2ed   :  { %v513_v17 = vpack.c.bf16 %v1423_v15, %v1423_v15 }
 0x2ee   :  { %v596_v18 = vsel %vm124_vm0, %v512_v16, 0  ;;  %v561_v16 = vpop.permute.xlu1 %560 }
 0x2ef   :  { %1068 = vmatprep.subr.msk.bf16.mxu0 %vm124_vm0, %v513_v17 }
 0x2f0   :  { %602 = vmatpush1.bf16.msra.mxu0 %v596_v18 }
 0x2f3   :  { %1069 = vmatmul.mubr.msk.bf16.vlgmr.msra.gmra.mrb[20].mxu0 %vm111_vm1, %v1118_v1 }
 0x2f4   :  { %643 = vmatprep.mubr.bf16.mxu0 %v1191_v4 }
 0x2fb   :  { %1070 = vmatmul.mubr.msk.bf16.gmra.mrb[24].mxu0 %vm111_vm1, %v1119_v0 }
 0x2fc   :  { %653 = vmatprep.mubr.bf16.mxu0 %v1191_v4 }
 0x303   :  { %1071 = vmatmul.mubr.msk.bf16.gmra.mrb[28].mxu0 %vm111_vm1, %v1120_v19 }
 0x304   :  { %663 = vmatprep.mubr.bf16.mxu0 %v1191_v4 }
 0x30b   :  { %1072 = vmatmul.mubr.msk.bf16.gmra.mrb[32].mxu0 %vm111_vm1, %v1121_v20 }
 0x30c   :  { %941 = vmatprep.mubr.bf16.mxu0 %v1191_v4 }
 0x3c6   :  { %v635_v22 = vpop.f32.mrb[20].mxu0 }
 0x3c7   :  { %v636_v23 = vadd.f32 %v635_v22, %v526_v21  ;;  %v637_v24 = vpop.f32.mrb[21].mxu0 }
 0x3c8   :  { %v638_v26 = vadd.f32 %v637_v24, %v526_v21  ;;  %v639_v27 = vpop.f32.mrb[22].mxu0 }
 0x3c9   :  { %v640_v28 = vadd.f32 %v639_v27, %v531_v25  ;;  %v641_v29 = vpop.f32.mrb[23].mxu0  ;;  %v674_v31 = vmax.f32 %v636_v23, 0.0  ;;  %v1123_v27 = vld [vmem:[%s1513_s3 + $0x28] sm:$0xff]  }
 0x3ca   :  { %v642_v30 = vadd.f32 %v641_v29, %v531_v25  ;;  %v675_v33 = vmax.f32 %v638_v26, 0.0  ;;  %v1122_v26 = vld [vmem:[%s1513_s3 + $0x20] sm:$0xff]   ;;  %v1125_v29 = vld [vmem:[%s1513_s3 + $0x38] sm:$0xff]  }
 0x3cb   :  { %v676_v32 = vmax.f32 %v640_v28, 0.0  ;;  %v1124_v28 = vld [vmem:[%s1513_s3 + $0x30] sm:$0xff]  }
 0x3cc   :  { %v677_v34 = vmax.f32 %v642_v30, 0.0  ;;  %v719_v30 = vpop.permute.xlu0 %718 }
 0x3cd   :  { %v690_v35 = vpack.c.bf16 %v676_v32, %v674_v31 }
 0x3ce   :  { %v691_v37 = vpack.c.bf16 %v677_v34, %v675_v33  ;;  %v645_v38 = vpop.f32.mrb[24].mxu0  ;;  %v724_v34 = vpop.permute.xlu1 %723 }
 0x3cf   :  { %v646_v39 = vadd.f32 %v645_v38, %v536_v36  ;;  %v647_v40 = vpop.f32.mrb[25].mxu0 }
 0x3d0   :  { %v648_v42 = vadd.f32 %v647_v40, %v536_v36  ;;  %v649_v43 = vpop.f32.mrb[26].mxu0  ;;  %788 = vmatprep.subr.bf16.mxu1 %v691_v37 }
 0x3d1   :  { %v650_v44 = vadd.f32 %v649_v43, %v541_v41  ;;  %v651_v45 = vpop.f32.mrb[27].mxu0  ;;  %789 = vmatpush1.bf16.msra.mxu1 %v690_v35  ;;  %v678_v47 = vmax.f32 %v646_v39, 0.0 }
 0x3d2   :  { %v652_v46 = vadd.f32 %v651_v45, %v541_v41  ;;  %v679_v49 = vmax.f32 %v648_v42, 0.0 }
 0x3d3   :  { %v680_v48 = vmax.f32 %v650_v44, 0.0  ;;  %v729_v44 = vpop.permute.xlu0 %728 }
 0x3d4   :  { %v681_v50 = vmax.f32 %v652_v46, 0.0 }
 0x3d5   :  { %v692_v51 = vpack.c.bf16 %v680_v48, %v678_v47 }
 0x3d6   :  { %v693_v53 = vpack.c.bf16 %v681_v50, %v679_v49  ;;  %v655_v54 = vpop.f32.mrb[28].mxu0  ;;  %v734_v49 = vpop.permute.xlu1 %733 }
 0x3d7   :  { %v656_v55 = vadd.f32 %v655_v54, %v546_v52  ;;  %v657_v56 = vpop.f32.mrb[29].mxu0 }
 0x3d8   :  { %v658_v58 = vadd.f32 %v657_v56, %v546_v52  ;;  %v659_v59 = vpop.f32.mrb[30].mxu0  ;;  %790 = vmatprep.subr.bf16.mxu1 %v693_v53 }
 0x3d9   :  { %v660_v60 = vadd.f32 %v659_v59, %v551_v57  ;;  %v661_v61 = vpop.f32.mrb[31].mxu0  ;;  %791 = vmatpush1.bf16.msra.mxu1 %v692_v51  ;;  %v682_v63 = vmax.f32 %v656_v55, 0.0 }
 0x3da   :  { %v662_v62 = vadd.f32 %v661_v61, %v551_v57  ;;  %v683_v6 = vmax.f32 %v658_v58, 0.0 }
 0x3db   :  { %v684_v5 = vmax.f32 %v660_v60, 0.0  ;;  %v739_v60 = vpop.permute.xlu0 %738 }
 0x3dc   :  { %v685_v7 = vmax.f32 %v662_v62, 0.0 }
 0x3dd   :  { %v694_v8 = vpack.c.bf16 %v684_v5, %v682_v63 }
 0x3de   :  { %v695_v10 = vpack.c.bf16 %v685_v7, %v683_v6  ;;  %v665_v11 = vpop.f32.mrb[32].mxu0  ;;  %v744_v6 = vpop.permute.xlu1 %743 }
 0x3df   :  { %v666_v12 = vadd.f32 %v665_v11, %v556_v9  ;;  %v667_v13 = vpop.f32.mrb[33].mxu0 }
 0x3e0   :  { %v668_v17 = vadd.f32 %v667_v13, %v556_v9  ;;  %v669_v18 = vpop.f32.mrb[34].mxu0  ;;  %792 = vmatprep.subr.bf16.mxu1 %v695_v10 }
 0x3e1   :  { %v670_v1 = vadd.f32 %v669_v18, %v561_v16  ;;  %v671_v0 = vpop.f32.mrb[35].mxu0  ;;  %793 = vmatpush1.bf16.msra.mxu1 %v694_v8  ;;  %v686_v20 = vmax.f32 %v666_v12, 0.0 }
 0x3e2   :  { %v672_v19 = vadd.f32 %v671_v0, %v561_v16  ;;  %v687_v22 = vmax.f32 %v668_v17, 0.0 }
 0x3e3   :  { %v688_v21 = vmax.f32 %v670_v1, 0.0  ;;  %v749_v1 = vpop.permute.xlu0 %748 }
 0x3e4   :  { %v689_v23 = vmax.f32 %v672_v19, 0.0 }
 0x3e5   :  { %v696_v24 = vpack.c.bf16 %v688_v21, %v686_v20 }
 0x3e6   :  { %v697_v25 = vpack.c.bf16 %v689_v23, %v687_v22  ;;  %v754_v22 = vpop.permute.xlu1 %753 }
 0x3e8   :  { %794 = vmatprep.subr.bf16.mxu1 %v697_v25 }
 0x3e9   :  { %795 = vmatpush1.bf16.msra.mxu1 %v696_v24 }
 0x3ec   :  { %1093 = vmatmul.mubr.msk.bf16.vlgmr.msra.gmra.mrb[16].mxu1 %vm304_vm2, %v1122_v26 }
 0x3ed   :  { %830 = vmatprep.mubr.bf16.mxu1 %v1191_v4 }
 0x3f4   :  { %1094 = vmatmul.mubr.msk.bf16.gmra.mrb[20].mxu1 %vm304_vm2, %v1123_v27 }
 0x3f5   :  { %840 = vmatprep.mubr.bf16.mxu1 %v1191_v4 }
 0x3fc   :  { %1095 = vmatmul.mubr.msk.bf16.gmra.mrb[24].mxu1 %vm304_vm2, %v1124_v28 }
 0x3fd   :  { %850 = vmatprep.mubr.bf16.mxu1 %v1191_v4 }
 0x404   :  { %1096 = vmatmul.mubr.msk.bf16.gmra.mrb[28].mxu1 %vm304_vm2, %v1125_v29 }
 0x4bf   :  { %v822_v31 = vpop.f32.mrb[16].mxu1 }
 0x4c0   :  { %v823_v32 = vadd.f32 %v822_v31, %v719_v30  ;;  %v824_v33 = vpop.f32.mrb[17].mxu1 }
 0x4c1   :  { %v825_v35 = vadd.f32 %v824_v33, %v719_v30  ;;  %v826_v36 = vpop.f32.mrb[18].mxu1 }
 0x4c2   :  { %v827_v37 = vadd.f32 %v826_v36, %v724_v34  ;;  %v828_v38 = vpop.f32.mrb[19].mxu1  ;;  %v861_v40 = vmax.f32 %v823_v32, 0.0 }
 0x4c3   :  { %v829_v39 = vadd.f32 %v828_v38, %v724_v34  ;;  %v862_v42 = vmax.f32 %v825_v35, 0.0  ;;  %v1126_v34 = vld [vmem:[%s1515_s5 + $0x8] sm:$0xff]   ;;  %v894_v35 = vpop.permute.xlu0 %893  ;;  %s1193_s5 = smov [#allocation2]  }
 0x4c4   :  { %v863_v41 = vmax.f32 %v827_v37, 0.0  ;;  %s1007_s4 = sshll.u32 %s1193_s5, 4  ;;  %s1008_s4 = int_to_ptr.vmem [resolvable:$true] %s1007_s4 }
 0x4c5   :  { %v864_v4 = vmax.f32 %v829_v39, 0.0  ;;  %s1143_s19 = scalar_lea.vmem %s1008_s4, 256  ;;  %p1148_p1 = scmp.lt.s32.totalorder %s1008_s4, %s1008_s4 }
 0x4c6   :  { %v877_v43 = vpack.c.bf16 %v863_v41, %v861_v40  ;;  %p1144_p0 = scmp.ne.s32.totalorder %s1008_s4, %s1143_s19  ;;  %p1149_p2 = scmp.lt.s32.totalorder %s1143_s19, %s1143_s19 }
 0x4c7   :  { %v878_v45 = vpack.c.bf16 %v864_v4, %v862_v42  ;;  %v832_v46 = vpop.f32.mrb[20].mxu1  ;;  %v489_v42 = vrot.slane %v1413_v2, 4  ;;  %v495_v4 = vrot.slane %v1415_v3, 4 }
 0x4c8   :  { %v833_v47 = vadd.f32 %v832_v46, %v729_v44  ;;  %v834_v48 = vpop.f32.mrb[21].mxu1  ;;  %p1150_p3 = por %p1149_p2, %p1148_p1 }
 0x4c9   :  { %v835_v50 = vadd.f32 %v834_v48, %v729_v44  ;;  %v836_v51 = vpop.f32.mrb[22].mxu1  ;;  %909 = vmatprep.subr.bf16.mxu0 %v878_v45  ;;  %v496_v44 = vadd.f32 %v1415_v3, %v495_v4 }
 0x4ca   :  { %v837_v52 = vadd.f32 %v836_v51, %v734_v49  ;;  %v838_v53 = vpop.f32.mrb[23].mxu1  ;;  %910 = vmatpush1.bf16.msra.mxu0 %v877_v43  ;;  %v865_v55 = vmax.f32 %v833_v47, 0.0  ;;  %v490_v43 = vadd.f32 %v1413_v2, %v489_v42  ;;  %p1151_p4 = pnand %p1150_p3, %p1144_p0 }
 0x4cb   :  { %v839_v54 = vadd.f32 %v838_v53, %v734_v49  ;;  %v866_v57 = vmax.f32 %v835_v50, 0.0  ;;  %v497_v47 = vrot.slane %v496_v44, 2 }
 0x4cc   :  { %v867_v56 = vmax.f32 %v837_v52, 0.0  ;;  %v491_v45 = vrot.slane %v490_v43, 2 }
 0x4cd   :  { %v868_v58 = vmax.f32 %v839_v54, 0.0 }
 0x4ce   :  { %v879_v59 = vpack.c.bf16 %v867_v56, %v865_v55  ;;  %v492_v53 = vadd.f32 %v491_v45, %v490_v43  ;;  %v498_v55 = vadd.f32 %v497_v47, %v496_v44 }
 0x4cf   :  { %v880_v61 = vpack.c.bf16 %v868_v58, %v866_v57  ;;  %v842_v62 = vpop.f32.mrb[24].mxu1 }
 0x4d0   :  { %v843_v63 = vadd.f32 %v842_v62, %v739_v60  ;;  %v844_v5 = vpop.f32.mrb[25].mxu1  ;;  %v493_v3 = vrot.slane %v492_v53, 1  ;;  %v499_v62 = vrot.slane %v498_v55, 1 }
 0x4d1   :  { %v845_v7 = vadd.f32 %v844_v5, %v739_v60  ;;  %v846_v8 = vpop.f32.mrb[26].mxu1  ;;  %911 = vmatprep.subr.bf16.mxu0 %v880_v61  ;;  %v984_v60 = vlaneseq }
 0x4d2   :  { %v847_v9 = vadd.f32 %v846_v8, %v744_v6  ;;  %v848_v10 = vpop.f32.mrb[27].mxu1  ;;  %912 = vmatpush1.bf16.msra.mxu0 %v879_v59  ;;  %v869_v12 = vmax.f32 %v843_v63, 0.0  ;;  %v1192_v59 = vmov 1966171168  }
 0x4d3   :  { %v849_v11 = vadd.f32 %v848_v10, %v744_v6  ;;  %v870_v16 = vmax.f32 %v845_v7, 0.0  ;;  %v982_v2 = vunpack.c.l.s4 %v1192_v59  ;;  %v985_v8 = vshrl.u32 %v984_v60, 7 }
 0x4d4   :  { %v871_v13 = vmax.f32 %v847_v9, 0.0  ;;  %v494_v9 = vadd.f32 %v493_v3, %v492_v53  ;;  %vm1480_vm3 = vcmp.lt.s32.totalorder %v984_v60, 256 }
 0x4d5   :  { %v872_v17 = vmax.f32 %v849_v11, 0.0  ;;  %v983_v7 = vunpack.c.0.s8 %v982_v2  ;;  %v500_v11 = vadd.f32 %v499_v62, %v498_v55 }
 0x4d6   :  { %v881_v18 = vpack.c.bf16 %v871_v13, %v869_v12 }
 0x4d7   :  { %v882_v0 = vpack.c.bf16 %v872_v17, %v870_v16  ;;  %v852_v19 = vpop.f32.mrb[28].mxu1  ;;  %v899_v16 = vpop.permute.xlu1 %898 }
 0x4d8   :  { %v853_v20 = vadd.f32 %v852_v19, %v749_v1  ;;  %v854_v21 = vpop.f32.mrb[29].mxu1 }
 0x4d9   :  { %v855_v23 = vadd.f32 %v854_v21, %v749_v1  ;;  %v856_v24 = vpop.f32.mrb[30].mxu1  ;;  %913 = vmatprep.subr.bf16.mxu0 %v882_v0 }
 0x4da   :  { %v857_v25 = vadd.f32 %v856_v24, %v754_v22  ;;  %v858_v26 = vpop.f32.mrb[31].mxu1  ;;  %914 = vmatpush1.bf16.msra.mxu0 %v881_v18  ;;  %v873_v28 = vmax.f32 %v853_v20, 0.0  ;;  %v986_v20 = vsub.s32 %v983_v7, %v985_v8 }
 0x4db   :  { %v859_v27 = vadd.f32 %v858_v26, %v754_v22  ;;  %v874_v30 = vmax.f32 %v855_v23, 0.0 }
 0x4dc   :  { %v875_v29 = vmax.f32 %v857_v25, 0.0 }
 0x4dd   :  { %v876_v31 = vmax.f32 %v859_v27, 0.0 }
 0x4de   :  { %v883_v32 = vpack.c.bf16 %v875_v29, %v873_v28 }
 0x4df   :  { %v884_v33 = vpack.c.bf16 %v876_v31, %v874_v30 }
 0x4e1   :  { %915 = vmatprep.subr.bf16.mxu0 %v884_v33 }
 0x4e2   :  { %916 = vmatpush1.bf16.msra.mxu0 %v883_v32 }
 0x4e5   :  { %1102 = vmatmul.mubr.msk.bf16.vlgmr.msra.gmra.mrb[36].mxu0 %vm304_vm2, %v1126_v34 }
 0x5b8   :  { %v943_v36 = vpop.f32.mrb[36].mxu0 }
 0x5b9   :  { %v944_v37 = vadd.f32 %v943_v36, %v894_v35  ;;  %v945_v38 = vpop.f32.mrb[37].mxu0 }
 0x5ba   :  { %v946_v39 = vadd.f32 %v945_v38, %v894_v35  ;;  %v947_v40 = vpop.f32.mrb[38].mxu0 }
 0x5bb   :  { %1135 = vtanh.f32 %v944_v37  ;;  %v949_v41 = vpop.f32.mrb[39].mxu0  ;;  %v948_v1 = vadd.f32 %v947_v40, %v899_v16 }
 0x5bc   :  { %1137 = vtanh.f32 %v946_v39  ;;  %v950_v21 = vadd.f32 %v949_v41, %v899_v16 }
 0x5c5   :  { %v1136_v46 = vpop.eup %1135 }
 0x5c6   :  { %v1138_v48 = vpop.eup %1137  ;;  %v954_v49 = vmul.f32 1.442695, %v1136_v46  ;;  %v962_v50 = vrot.slane %v1136_v46, 4 }
 0x5c7   :  { %v956_v51 = vmul.f32 1.442695, %v1138_v48  ;;  %v968_v52 = vrot.slane %v1138_v48, 4 }
 0x5c8   :  { %1139 = vpow2.f32 %v954_v49  ;;  %v963_v54 = vadd.f32 %v1136_v46, %v962_v50 }
 0x5c9   :  { %1141 = vpow2.f32 %v956_v51  ;;  %v969_v56 = vadd.f32 %v1138_v48, %v968_v52 }
 0x5ca   :  { %v964_v57 = vrot.slane %v963_v54, 2 }
 0x5cb   :  { %v970_v58 = vrot.slane %v969_v56, 2 }
 0x5cc   :  { %v965_v61 = vadd.f32 %v964_v57, %v963_v54 }
 0x5cd   :  { %v971_v63 = vadd.f32 %v970_v58, %v969_v56 }
 0x5ce   :  { %v966_v5 = vrot.slane %v965_v61, 1 }
 0x5cf   :  { %v972_v6 = vrot.slane %v971_v63, 1 }
 0x5d0   :  { %v967_v10 = vadd.f32 %v966_v5, %v965_v61 }
 0x5d1   :  { %v973_v12 = vadd.f32 %v972_v6, %v971_v63 }
 0x5d2   :  { %v1140_v13 = vpop.eup %1139  ;;  %v974_v17 = vadd.f32 %v967_v10, %v494_v9 }
 0x5d3   :  { %v1142_v18 = vpop.eup %1141  ;;  %v958_v0 = vmul.f32 %v1140_v13, %v1421_v14  ;;  %v975_v19 = vadd.f32 %v973_v12, %v500_v11 }
 0x5d4   :  { %v959_v22 = vmul.f32 %v1142_v18, %v1423_v15 }
 0x5d5   :  { %v960_v23 = vadd.f32 %v958_v0, %v948_v1  ;;  %v980_v24 = vcombine.low %v974_v17, %v975_v19 }
 0x5d6   :  { %v961_v25 = vadd.f32 %v959_v22, %v950_v21 }
 0x5d7   :  { %976 = vst [vmem:[#allocation2] sm:$0xff] %v960_v23  ;;  %v987_v26 = vrot.slane %v980_v24, %v986_v20 }
 0x5d8   :  { %977 = vst [vmem:[#allocation2 + $0x8] sm:$0xff] %v961_v25 }
 0x5d9   :  { %1154 = shalt.err (!%p1151_p4)
}
 0x5da   :  { %s1155_s22 = scalar_lea.hbm %s1517_s7, 256 }
 0x5db   :  { %p1156_p5 = scmp.ne.s32.totalorder %s1517_s7, %s1155_s22  ;;  %p1159_p6 = scmp.lt.u32.totalorder %s1155_s22, %s1517_s7 }
 0x5dd   :  { %p1161_p7 = pnand %p1159_p6, %p1156_p5 }
 0x5df   :  { %1164 = shalt.err (!%p1161_p7)
}
 0x5e0   :  { %1010 = dma.vmem_to_hbm [thread:$0]  %s1008_s4, 256, %s1517_s7, [#allocation3]   ;;  %v994_v14 = vrot.slane %v987_v26, %v986_v20 }
 0x5e1   :  { %s1165_s29 = scalar_lea.vmem %s1018_s18, 32  ;;  %p1170_p9 = scmp.lt.s32.totalorder %s1018_s18, %s1018_s18 }
 0x5e2   :  { %1000 = vst.msk [vmem:[#allocation4] sm:$0x3] %vm1480_vm3, %v994_v14  ;;  %p1166_p8 = scmp.ne.s32.totalorder %s1018_s18, %s1165_s29  ;;  %p1171_p10 = scmp.lt.s32.totalorder %s1165_s29, %s1165_s29 }
 0x5e4   :  { %p1172_p11 = por %p1171_p10, %p1170_p9 }
 0x5e6   :  { %p1173_p12 = pnand %p1172_p11, %p1166_p8 }
 0x5e8   :  { %1176 = shalt.err (!%p1173_p12)
}
 0x5e9   :  { %s1177_s0 = scalar_lea.hbm %s1518_s8, 32 }
 0x5ea   :  { %p1178_p13 = scmp.ne.s32.totalorder %s1518_s8, %s1177_s0  ;;  %p1181_p0 = scmp.lt.u32.totalorder %s1177_s0, %s1518_s8 }
 0x5ec   :  { %p1183_p1 = pnand %p1181_p0, %p1178_p13 }
 0x5ee   :  { %1186 = shalt.err (!%p1183_p1)
}
 0x5ef   :  { %1020 = dma.vmem_to_hbm [thread:$0]  %s1018_s18, 32, %s1518_s8, [#allocation5]  }
 0x5f0   :  { %1187 = dma.done.wait [#allocation3], 256  }
 0x5f1   :  { %1188 = vsyncadd [#allocation3], 4294967040 }
 0x5f2   :  { %1189 = dma.done.wait [#allocation5], 32  }
 0x5f3   :  { %1190 = vsyncadd [#allocation5], 4294967264 }
 0x5f4   :  { %1027 = vsyncpa [#allocation3], 1 }
 0x5f5   :  { %1028 = vsyncpa [#allocation5], 1 }

</bundles_post_ra>
